<compile_context>
chip_gen: v5e
topology: v5e:2x2
jax: 0.10.0
libtpu: 0.0.40
codegen_flags: <defaults>
</compile_context>

<pallas_src>
import functools
import jax
import jax.numpy as jnp
from jax.experimental import pallas as pl
from jax.experimental.pallas import tpu as pltpu


def encoder_layer_kernel(src_ref, mask_ref,
                         wqkv_ref, bqkv_ref, wo_ref, bo_ref,
                         g1_ref, be1_ref,
                         w1_ref, b1_ref, w2_ref, b2_ref,
                         g2_ref, be2_ref,
                         out_ref,
                         qh_ref, kh_ref, vh_ref, ctx_ref,
                         *, n_heads, head_dim, hid_dim, eps=1e-5):
    H = hid_dim
    x = src_ref[0]                                  # (S, H) float32
    x_bf = x.astype(jnp.bfloat16)

    # Hoisted key mask: (1, 1, S) bool, broadcasts over heads and query rows.
    key_keep = mask_ref[...] != 0.0

    # ---- fused QKV projection: one MXU matmul (Q scale folded into the weights) ----
    qkv = (jnp.dot(x_bf, wqkv_ref[...], preferred_element_type=jnp.float32)
           + bqkv_ref[...])                         # (S, 3H) float32

    # Split into head-major (n_heads, S, head_dim) via static column slices into VMEM
    # scratch (remaining relayout cost; avoids concatenate / transposes in the hot path).
    for h in range(n_heads):
        lo = h * head_dim
        qh_ref[h] = qkv[:, lo:lo + head_dim]
        kh_ref[h] = qkv[:, H + lo:H + lo + head_dim]
        vh_ref[h] = qkv[:, 2 * H + lo:2 * H + lo + head_dim]

    q3 = qh_ref[...].astype(jnp.bfloat16)           # (nh, S, hd)
    k3 = kh_ref[...].astype(jnp.bfloat16)
    v3 = vh_ref[...].astype(jnp.bfloat16)

    # ---- batched multi-head attention (softmax statistics in float32) ----
    energy = jnp.einsum('hqd,hkd->hqk', q3, k3,
                        preferred_element_type=jnp.float32)        # (nh, S, S)
    energy = jnp.where(key_keep, energy, jnp.float32(-1e10))        # mask before anything else
    m = jnp.max(energy, axis=-1, keepdims=True)
    e = jnp.exp(energy - m)
    attn = e * pl.reciprocal(jnp.sum(e, axis=-1, keepdims=True), approx=True)
    ctx3 = jnp.einsum('hqk,hkd->hqd', attn.astype(jnp.bfloat16), v3,
                      preferred_element_type=jnp.float32)          # (nh, S, hd)

    # Merge heads back to (S, H) via static column writes into VMEM scratch.
    for h in range(n_heads):
        lo = h * head_dim
        ctx_ref[:, lo:lo + head_dim] = ctx3[h]

    attn_out = (jnp.dot(ctx_ref[...].astype(jnp.bfloat16), wo_ref[...],
                        preferred_element_type=jnp.float32) + bo_ref[...])

    def layer_norm(inp, g_ref, b_ref):
        mu = jnp.mean(inp, axis=-1, keepdims=True)
        var = jnp.mean(jnp.square(inp - mu), axis=-1, keepdims=True)
        return (inp - mu) * jax.lax.rsqrt(var + eps) * g_ref[...] + b_ref[...]

    # residual + LN (float32)
    y = layer_norm(x + attn_out, g1_ref, be1_ref)

    # ---- position-wise feed-forward ----
    h1 = jnp.maximum(
        jnp.dot(y.astype(jnp.bfloat16), w1_ref[...],
                preferred_element_type=jnp.float32) + b1_ref[...], 0.0)
    ff = (jnp.dot(h1.astype(jnp.bfloat16), w2_ref[...],
                  preferred_element_type=jnp.float32) + b2_ref[...])

    out_ref[0] = layer_norm(y + ff, g2_ref, be2_ref)


def encoder_layer(src, mask, params, n_heads):
    B, S, H = src.shape
    head_dim = H // n_heads
    P = params["w1"].shape[1]

    inv_scale = 1.0 / (head_dim ** 0.5)
    # Fuse Q/K/V into one (H, 3H) weight; fold the 1/sqrt(head_dim) scale into Q.
    wqkv = jnp.concatenate(
        [params["wq"] * inv_scale, params["wk"], params["wv"]], axis=1
    ).astype(jnp.bfloat16)                                      # (H, 3H) bf16
    bqkv = jnp.concatenate(
        [params["bq"] * inv_scale, params["bk"], params["bv"]], axis=1)   # (1, 3H) f32
    wo = params["wo"].astype(jnp.bfloat16)
    w1 = params["w1"].astype(jnp.bfloat16)
    w2 = params["w2"].astype(jnp.bfloat16)

    def fixed(shape):
        nd = len(shape)
        return pl.BlockSpec(shape, lambda b, _nd=nd: (0,) * _nd)

    in_specs = [
        pl.BlockSpec((1, S, H), lambda b: (b, 0, 0)),   # src
        pl.BlockSpec((1, 1, S), lambda b: (b, 0, 0)),   # mask
        fixed((H, 3 * H)), fixed((1, 3 * H)),           # wqkv, bqkv
        fixed((H, H)), fixed((1, H)),                   # wo, bo
        fixed((1, H)), fixed((1, H)),                   # ln1 gamma, beta
        fixed((H, P)), fixed((1, P)),                   # w1, b1
        fixed((P, H)), fixed((1, H)),                   # w2, b2
        fixed((1, H)), fixed((1, H)),                   # ln2 gamma, beta
    ]

    kernel = functools.partial(encoder_layer_kernel,
                               n_heads=n_heads, head_dim=head_dim, hid_dim=H)

    return pl.pallas_call(
        kernel,
        out_shape=jax.ShapeDtypeStruct((B, S, H), jnp.float32),
        grid=(B,),
        in_specs=in_specs,
        out_specs=pl.BlockSpec((1, S, H), lambda b: (b, 0, 0)),
        scratch_shapes=[
            pltpu.VMEM((n_heads, S, head_dim), jnp.float32),   # q heads
            pltpu.VMEM((n_heads, S, head_dim), jnp.float32),   # k heads
            pltpu.VMEM((n_heads, S, head_dim), jnp.float32),   # v heads
            pltpu.VMEM((S, H), jnp.float32),                   # merged context
        ],
        compiler_params=pltpu.CompilerParams(
            dimension_semantics=("parallel",)),
    )(src, mask, wqkv, bqkv, wo, params["bo"],
      params["g1"], params["be1"],
      w1, params["b1"], w2, params["b2"],
      params["g2"], params["be2"])


# -------------------- pure-JAX reference (for sanity check) --------------------
def encoder_layer_ref(src, mask, params, n_heads, eps=1e-5):
    B, S, H = src.shape
    hd = H // n_heads

    def lin(x, w, b):
        return x @ w + b[0]

    def ln(x, g, b):
        mu = x.mean(-1, keepdims=True)
        var = ((x - mu) ** 2).mean(-1, keepdims=True)
        return (x - mu) * jax.lax.rsqrt(var + eps) * g[0] + b[0]

    q = lin(src, params["wq"], params["bq"]).reshape(B, S, n_heads, hd).transpose(0, 2, 1, 3)
    k = lin(src, params["wk"], params["bk"]).reshape(B, S, n_heads, hd).transpose(0, 2, 1, 3)
    v = lin(src, params["wv"], params["bv"]).reshape(B, S, n_heads, hd).transpose(0, 2, 1, 3)
    energy = jnp.einsum("bhqd,bhkd->bhqk", q, k) / jnp.sqrt(jnp.float32(hd))
    energy = jnp.where(mask[:, None, :, :] == 0.0, -1e10, energy)
    attn = jax.nn.softmax(energy, axis=-1)
    ctx = jnp.einsum("bhqk,bhkd->bhqd", attn, v).transpose(0, 2, 1, 3).reshape(B, S, H)
    attn_out = lin(ctx, params["wo"], params["bo"])
    y = ln(src + attn_out, params["g1"], params["be1"])
    ff = lin(jnp.maximum(lin(y, params["w1"], params["b1"]), 0.0),
             params["w2"], params["b2"])
    return ln(y + ff, params["g2"], params["be2"])


if __name__ == "__main__":
    # NOTE: tiny smoke-test shapes (H=32 < 128 lanes) — correctness check only,
    # not a performance target.
    B, S, H, n_heads, P = 2, 8, 32, 4, 64

    key = jax.random.PRNGKey(0)
    ks = jax.random.split(key, 16)

    def w(k, shape, scale=0.1):
        return (scale * jax.random.normal(k, shape)).astype(jnp.float32)

    params = {
        "wq": w(ks[0], (H, H)), "bq": w(ks[1], (1, H)),
        "wk": w(ks[2], (H, H)), "bk": w(ks[3], (1, H)),
        "wv": w(ks[4], (H, H)), "bv": w(ks[5], (1, H)),
        "wo": w(ks[6], (H, H)), "bo": w(ks[7], (1, H)),
        "g1": jnp.ones((1, H), jnp.float32), "be1": jnp.zeros((1, H), jnp.float32),
        "w1": w(ks[8], (H, P)), "b1": w(ks[9], (1, P)),
        "w2": w(ks[10], (P, H)), "b2": w(ks[11], (1, H)),
        "g2": jnp.ones((1, H), jnp.float32), "be2": jnp.zeros((1, H), jnp.float32),
    }

    src = jax.random.normal(ks[12], (B, S, H), dtype=jnp.float32)
    # mask: batch 0 fully visible; batch 1 masks out the last 2 key positions
    mask = jnp.ones((B, 1, S), jnp.float32)
    mask = mask.at[1, 0, S - 2:].set(0.0)

    out = encoder_layer(src, mask, params, n_heads)
    out = jax.block_until_ready(out)

    ref = encoder_layer_ref(src, mask, params, n_heads)
    err = float(jnp.max(jnp.abs(out - ref)))
    assert out.shape == (B, S, H)
    assert err < 5e-2, f"max abs error too large: {err}"

    print("KERNEL_OK")
</pallas_src>

<mosaic_0001>
module attributes {stable_mosaic.version = 11 : i64} {
  func.func @encoder_layer_kernel(%arg0: i32, %arg1: memref<1x8x32xf32, #tpu.memory_space<vmem>>, %arg2: memref<1x1x8xf32, #tpu.memory_space<vmem>>, %arg3: memref<32x96xbf16, #tpu.memory_space<vmem>>, %arg4: memref<1x96xf32, #tpu.memory_space<vmem>>, %arg5: memref<32x32xbf16, #tpu.memory_space<vmem>>, %arg6: memref<1x32xf32, #tpu.memory_space<vmem>>, %arg7: memref<1x32xf32, #tpu.memory_space<vmem>>, %arg8: memref<1x32xf32, #tpu.memory_space<vmem>>, %arg9: memref<32x64xbf16, #tpu.memory_space<vmem>>, %arg10: memref<1x64xf32, #tpu.memory_space<vmem>>, %arg11: memref<64x32xbf16, #tpu.memory_space<vmem>>, %arg12: memref<1x32xf32, #tpu.memory_space<vmem>>, %arg13: memref<1x32xf32, #tpu.memory_space<vmem>>, %arg14: memref<1x32xf32, #tpu.memory_space<vmem>>, %arg15: memref<1x8x32xf32, #tpu.memory_space<vmem>>, %arg16: memref<4x8x8xf32, #tpu.memory_space<vmem>>, %arg17: memref<4x8x8xf32, #tpu.memory_space<vmem>>, %arg18: memref<4x8x8xf32, #tpu.memory_space<vmem>>, %arg19: memref<8x32xf32, #tpu.memory_space<vmem>>) attributes {dimension_semantics = [#tpu.dimension_semantics<parallel>], iteration_bounds = array<i64: 2>, scalar_prefetch = 0 : i64, scratch_operands = 4 : i64, tpu.core_type = #tpu.core_type<tc>, window_params = [{transform_indices = @transform_0, window_bounds = array<i64: 1, 8, 32>}, {transform_indices = @transform_1, window_bounds = array<i64: 1, 1, 8>}, {pipeline_mode = #tpu.pipeline_mode<synchronous>, transform_indices = @transform_2, window_bounds = array<i64: 32, 96>}, {pipeline_mode = #tpu.pipeline_mode<synchronous>, transform_indices = @transform_3, window_bounds = array<i64: 1, 96>}, {pipeline_mode = #tpu.pipeline_mode<synchronous>, transform_indices = @transform_4, window_bounds = array<i64: 32, 32>}, {pipeline_mode = #tpu.pipeline_mode<synchronous>, transform_indices = @transform_5, window_bounds = array<i64: 1, 32>}, {pipeline_mode = #tpu.pipeline_mode<synchronous>, transform_indices = @transform_6, window_bounds = array<i64: 1, 32>}, {pipeline_mode = #tpu.pipeline_mode<synchronous>, transform_indices = @transform_7, window_bounds = array<i64: 1, 32>}, {pipeline_mode = #tpu.pipeline_mode<synchronous>, transform_indices = @transform_8, window_bounds = array<i64: 32, 64>}, {pipeline_mode = #tpu.pipeline_mode<synchronous>, transform_indices = @transform_9, window_bounds = array<i64: 1, 64>}, {pipeline_mode = #tpu.pipeline_mode<synchronous>, transform_indices = @transform_10, window_bounds = array<i64: 64, 32>}, {pipeline_mode = #tpu.pipeline_mode<synchronous>, transform_indices = @transform_11, window_bounds = array<i64: 1, 32>}, {pipeline_mode = #tpu.pipeline_mode<synchronous>, transform_indices = @transform_12, window_bounds = array<i64: 1, 32>}, {pipeline_mode = #tpu.pipeline_mode<synchronous>, transform_indices = @transform_13, window_bounds = array<i64: 1, 32>}, {transform_indices = @transform_14, window_bounds = array<i64: 1, 8, 32>}]} {
    %c0 = arith.constant 0 : index
    %c0_0 = arith.constant 0 : index
    %c0_1 = arith.constant 0 : index
    %0 = vector.load %arg1[%c0, %c0_0, %c0_1] : memref<1x8x32xf32, #tpu.memory_space<vmem>>, vector<1x8x32xf32>
    %1 = vector.shape_cast %0 : vector<1x8x32xf32> to vector<8x32xf32>
    %2 = arith.truncf %1 : vector<8x32xf32> to vector<8x32xbf16>
    %c0_2 = arith.constant 0 : index
    %c0_3 = arith.constant 0 : index
    %c0_4 = arith.constant 0 : index
    %3 = vector.load %arg2[%c0_2, %c0_3, %c0_4] : memref<1x1x8xf32, #tpu.memory_space<vmem>>, vector<1x1x8xf32>
    %cst = arith.constant 0.000000e+00 : f32
    %4 = vector.broadcast %cst : f32 to vector<1x1x8xf32>
    %5 = arith.cmpf one, %3, %4 : vector<1x1x8xf32>
    %c0_5 = arith.constant 0 : index
    %c0_6 = arith.constant 0 : index
    %6 = vector.load %arg3[%c0_5, %c0_6] : memref<32x96xbf16, #tpu.memory_space<vmem>>, vector<32x96xbf16>
    %cst_7 = arith.constant dense<0.000000e+00> : vector<8x96xf32>
    %7 = tpu.matmul %2, %6, %cst_7 {dimension_numbers = #tpu.dot_dimension_numbers<[1], [0], [0], [1], [0, 0, 1, 1], [], []>} : vector<8x32xbf16>, vector<32x96xbf16>, vector<8x96xf32> -> vector<8x96xf32>
    %c0_8 = arith.constant 0 : index
    %c0_9 = arith.constant 0 : index
    %8 = vector.load %arg4[%c0_8, %c0_9] : memref<1x96xf32, #tpu.memory_space<vmem>>, vector<1x96xf32>
    %9 = vector.broadcast %8 : vector<1x96xf32> to vector<8x96xf32>
    %10 = arith.addf %7, %9 : vector<8x96xf32>
    %11 = vector.extract_strided_slice %10 {offsets = [0, 0], sizes = [8, 8], strides = [1, 1]} : vector<8x96xf32> to vector<8x8xf32>
    %c0_10 = arith.constant 0 : index
    %c0_11 = arith.constant 0 : index
    %c0_12 = arith.constant 0 : index
    %12 = vector.load %arg16[%c0_10, %c0_11, %c0_12] : memref<4x8x8xf32, #tpu.memory_space<vmem>>, vector<1x8x8xf32>
    %13 = vector.shape_cast %12 : vector<1x8x8xf32> to vector<8x8xf32>
    %14 = vector.shape_cast %11 : vector<8x8xf32> to vector<1x8x8xf32>
    tpu.vector_store %arg16[%c0_10, %c0_11, %c0_12], %14 {strides = array<i32>} : memref<4x8x8xf32, #tpu.memory_space<vmem>>, vector<1x8x8xf32>,
    %15 = vector.extract_strided_slice %10 {offsets = [0, 32], sizes = [8, 8], strides = [1, 1]} : vector<8x96xf32> to vector<8x8xf32>
    %c0_13 = arith.constant 0 : index
    %c0_14 = arith.constant 0 : index
    %c0_15 = arith.constant 0 : index
    %16 = vector.load %arg17[%c0_13, %c0_14, %c0_15] : memref<4x8x8xf32, #tpu.memory_space<vmem>>, vector<1x8x8xf32>
    %17 = vector.shape_cast %16 : vector<1x8x8xf32> to vector<8x8xf32>
    %18 = vector.shape_cast %15 : vector<8x8xf32> to vector<1x8x8xf32>
    tpu.vector_store %arg17[%c0_13, %c0_14, %c0_15], %18 {strides = array<i32>} : memref<4x8x8xf32, #tpu.memory_space<vmem>>, vector<1x8x8xf32>,
    %19 = vector.extract_strided_slice %10 {offsets = [0, 64], sizes = [8, 8], strides = [1, 1]} : vector<8x96xf32> to vector<8x8xf32>
    %c0_16 = arith.constant 0 : index
    %c0_17 = arith.constant 0 : index
    %c0_18 = arith.constant 0 : index
    %20 = vector.load %arg18[%c0_16, %c0_17, %c0_18] : memref<4x8x8xf32, #tpu.memory_space<vmem>>, vector<1x8x8xf32>
    %21 = vector.shape_cast %20 : vector<1x8x8xf32> to vector<8x8xf32>
    %22 = vector.shape_cast %19 : vector<8x8xf32> to vector<1x8x8xf32>
    tpu.vector_store %arg18[%c0_16, %c0_17, %c0_18], %22 {strides = array<i32>} : memref<4x8x8xf32, #tpu.memory_space<vmem>>, vector<1x8x8xf32>,
    %23 = vector.extract_strided_slice %10 {offsets = [0, 8], sizes = [8, 8], strides = [1, 1]} : vector<8x96xf32> to vector<8x8xf32>
    %c1 = arith.constant 1 : index
    %c0_19 = arith.constant 0 : index
    %c0_20 = arith.constant 0 : index
    %24 = vector.load %arg16[%c1, %c0_19, %c0_20] : memref<4x8x8xf32, #tpu.memory_space<vmem>>, vector<1x8x8xf32>
    %25 = vector.shape_cast %24 : vector<1x8x8xf32> to vector<8x8xf32>
    %26 = vector.shape_cast %23 : vector<8x8xf32> to vector<1x8x8xf32>
    tpu.vector_store %arg16[%c1, %c0_19, %c0_20], %26 {strides = array<i32>} : memref<4x8x8xf32, #tpu.memory_space<vmem>>, vector<1x8x8xf32>,
    %27 = vector.extract_strided_slice %10 {offsets = [0, 40], sizes = [8, 8], strides = [1, 1]} : vector<8x96xf32> to vector<8x8xf32>
    %c1_21 = arith.constant 1 : index
    %c0_22 = arith.constant 0 : index
    %c0_23 = arith.constant 0 : index
    %28 = vector.load %arg17[%c1_21, %c0_22, %c0_23] : memref<4x8x8xf32, #tpu.memory_space<vmem>>, vector<1x8x8xf32>
    %29 = vector.shape_cast %28 : vector<1x8x8xf32> to vector<8x8xf32>
    %30 = vector.shape_cast %27 : vector<8x8xf32> to vector<1x8x8xf32>
    tpu.vector_store %arg17[%c1_21, %c0_22, %c0_23], %30 {strides = array<i32>} : memref<4x8x8xf32, #tpu.memory_space<vmem>>, vector<1x8x8xf32>,
    %31 = vector.extract_strided_slice %10 {offsets = [0, 72], sizes = [8, 8], strides = [1, 1]} : vector<8x96xf32> to vector<8x8xf32>
    %c1_24 = arith.constant 1 : index
    %c0_25 = arith.constant 0 : index
    %c0_26 = arith.constant 0 : index
    %32 = vector.load %arg18[%c1_24, %c0_25, %c0_26] : memref<4x8x8xf32, #tpu.memory_space<vmem>>, vector<1x8x8xf32>
    %33 = vector.shape_cast %32 : vector<1x8x8xf32> to vector<8x8xf32>
    %34 = vector.shape_cast %31 : vector<8x8xf32> to vector<1x8x8xf32>
    tpu.vector_store %arg18[%c1_24, %c0_25, %c0_26], %34 {strides = array<i32>} : memref<4x8x8xf32, #tpu.memory_space<vmem>>, vector<1x8x8xf32>,
    %35 = vector.extract_strided_slice %10 {offsets = [0, 16], sizes = [8, 8], strides = [1, 1]} : vector<8x96xf32> to vector<8x8xf32>
    %c2 = arith.constant 2 : index
    %c0_27 = arith.constant 0 : index
    %c0_28 = arith.constant 0 : index
    %36 = vector.load %arg16[%c2, %c0_27, %c0_28] : memref<4x8x8xf32, #tpu.memory_space<vmem>>, vector<1x8x8xf32>
    %37 = vector.shape_cast %36 : vector<1x8x8xf32> to vector<8x8xf32>
    %38 = vector.shape_cast %35 : vector<8x8xf32> to vector<1x8x8xf32>
    tpu.vector_store %arg16[%c2, %c0_27, %c0_28], %38 {strides = array<i32>} : memref<4x8x8xf32, #tpu.memory_space<vmem>>, vector<1x8x8xf32>,
    %39 = vector.extract_strided_slice %10 {offsets = [0, 48], sizes = [8, 8], strides = [1, 1]} : vector<8x96xf32> to vector<8x8xf32>
    %c2_29 = arith.constant 2 : index
    %c0_30 = arith.constant 0 : index
    %c0_31 = arith.constant 0 : index
    %40 = vector.load %arg17[%c2_29, %c0_30, %c0_31] : memref<4x8x8xf32, #tpu.memory_space<vmem>>, vector<1x8x8xf32>
    %41 = vector.shape_cast %40 : vector<1x8x8xf32> to vector<8x8xf32>
    %42 = vector.shape_cast %39 : vector<8x8xf32> to vector<1x8x8xf32>
    tpu.vector_store %arg17[%c2_29, %c0_30, %c0_31], %42 {strides = array<i32>} : memref<4x8x8xf32, #tpu.memory_space<vmem>>, vector<1x8x8xf32>,
    %43 = vector.extract_strided_slice %10 {offsets = [0, 80], sizes = [8, 8], strides = [1, 1]} : vector<8x96xf32> to vector<8x8xf32>
    %c2_32 = arith.constant 2 : index
    %c0_33 = arith.constant 0 : index
    %c0_34 = arith.constant 0 : index
    %44 = vector.load %arg18[%c2_32, %c0_33, %c0_34] : memref<4x8x8xf32, #tpu.memory_space<vmem>>, vector<1x8x8xf32>
    %45 = vector.shape_cast %44 : vector<1x8x8xf32> to vector<8x8xf32>
    %46 = vector.shape_cast %43 : vector<8x8xf32> to vector<1x8x8xf32>
    tpu.vector_store %arg18[%c2_32, %c0_33, %c0_34], %46 {strides = array<i32>} : memref<4x8x8xf32, #tpu.memory_space<vmem>>, vector<1x8x8xf32>,
    %47 = vector.extract_strided_slice %10 {offsets = [0, 24], sizes = [8, 8], strides = [1, 1]} : vector<8x96xf32> to vector<8x8xf32>
    %c3 = arith.constant 3 : index
    %c0_35 = arith.constant 0 : index
    %c0_36 = arith.constant 0 : index
    %48 = vector.load %arg16[%c3, %c0_35, %c0_36] : memref<4x8x8xf32, #tpu.memory_space<vmem>>, vector<1x8x8xf32>
    %49 = vector.shape_cast %48 : vector<1x8x8xf32> to vector<8x8xf32>
    %50 = vector.shape_cast %47 : vector<8x8xf32> to vector<1x8x8xf32>
    tpu.vector_store %arg16[%c3, %c0_35, %c0_36], %50 {strides = array<i32>} : memref<4x8x8xf32, #tpu.memory_space<vmem>>, vector<1x8x8xf32>,
    %51 = vector.extract_strided_slice %10 {offsets = [0, 56], sizes = [8, 8], strides = [1, 1]} : vector<8x96xf32> to vector<8x8xf32>
    %c3_37 = arith.constant 3 : index
    %c0_38 = arith.constant 0 : index
    %c0_39 = arith.constant 0 : index
    %52 = vector.load %arg17[%c3_37, %c0_38, %c0_39] : memref<4x8x8xf32, #tpu.memory_space<vmem>>, vector<1x8x8xf32>
    %53 = vector.shape_cast %52 : vector<1x8x8xf32> to vector<8x8xf32>
    %54 = vector.shape_cast %51 : vector<8x8xf32> to vector<1x8x8xf32>
    tpu.vector_store %arg17[%c3_37, %c0_38, %c0_39], %54 {strides = array<i32>} : memref<4x8x8xf32, #tpu.memory_space<vmem>>, vector<1x8x8xf32>,
    %55 = vector.extract_strided_slice %10 {offsets = [0, 88], sizes = [8, 8], strides = [1, 1]} : vector<8x96xf32> to vector<8x8xf32>
    %c3_40 = arith.constant 3 : index
    %c0_41 = arith.constant 0 : index
    %c0_42 = arith.constant 0 : index
    %56 = vector.load %arg18[%c3_40, %c0_41, %c0_42] : memref<4x8x8xf32, #tpu.memory_space<vmem>>, vector<1x8x8xf32>
    %57 = vector.shape_cast %56 : vector<1x8x8xf32> to vector<8x8xf32>
    %58 = vector.shape_cast %55 : vector<8x8xf32> to vector<1x8x8xf32>
    tpu.vector_store %arg18[%c3_40, %c0_41, %c0_42], %58 {strides = array<i32>} : memref<4x8x8xf32, #tpu.memory_space<vmem>>, vector<1x8x8xf32>,
    %c0_43 = arith.constant 0 : index
    %c0_44 = arith.constant 0 : index
    %c0_45 = arith.constant 0 : index
    %59 = vector.load %arg16[%c0_43, %c0_44, %c0_45] : memref<4x8x8xf32, #tpu.memory_space<vmem>>, vector<4x8x8xf32>
    %60 = arith.truncf %59 : vector<4x8x8xf32> to vector<4x8x8xbf16>
    %c0_46 = arith.constant 0 : index
    %c0_47 = arith.constant 0 : index
    %c0_48 = arith.constant 0 : index
    %61 = vector.load %arg17[%c0_46, %c0_47, %c0_48] : memref<4x8x8xf32, #tpu.memory_space<vmem>>, vector<4x8x8xf32>
    %62 = arith.truncf %61 : vector<4x8x8xf32> to vector<4x8x8xbf16>
    %c0_49 = arith.constant 0 : index
    %c0_50 = arith.constant 0 : index
    %c0_51 = arith.constant 0 : index
    %63 = vector.load %arg18[%c0_49, %c0_50, %c0_51] : memref<4x8x8xf32, #tpu.memory_space<vmem>>, vector<4x8x8xf32>
    %64 = arith.truncf %63 : vector<4x8x8xf32> to vector<4x8x8xbf16>
    "tpu.trace_start"() <{level = 10 : i32, message = "hqd,hkd->hqk"}> : () -> ()
    %cst_52 = arith.constant dense<0.000000e+00> : vector<4x8x8xf32>
    %65 = tpu.matmul %60, %62, %cst_52 {dimension_numbers = #tpu.dot_dimension_numbers<[2], [2], [1], [1], [0, 0, 0, 1, 1, 1], [0], [0]>} : vector<4x8x8xbf16>, vector<4x8x8xbf16>, vector<4x8x8xf32> -> vector<4x8x8xf32>
    %cst_53 = arith.constant -1.000000e+10 : f32
    "tpu.trace_stop"() : () -> ()
    %66 = vector.shape_cast %5 : vector<1x1x8xi1> to vector<1x1x8xi1>
    %67 = vector.broadcast %66 : vector<1x1x8xi1> to vector<4x8x8xi1>
    %68 = vector.broadcast %cst_53 : f32 to vector<4x8x8xf32>
    %69 = arith.select %67, %65, %68 : vector<4x8x8xi1>, vector<4x8x8xf32>
    %cst_54 = arith.constant dense<0xFF800000> : vector<4x8xf32>
    %70 = vector.multi_reduction <maximumf>, %69, %cst_54 [2] : vector<4x8x8xf32> to vector<4x8xf32>
    %71 = vector.shape_cast %70 : vector<4x8xf32> to vector<4x8x1xf32>
    %72 = vector.broadcast %71 : vector<4x8x1xf32> to vector<4x8x8xf32>
    %73 = arith.subf %69, %72 : vector<4x8x8xf32>
    %74 = math.exp %73 : vector<4x8x8xf32>
    %cst_55 = arith.constant dense<0.000000e+00> : vector<4x8xf32>
    %75 = vector.multi_reduction <add>, %74, %cst_55 [2] : vector<4x8x8xf32> to vector<4x8xf32>
    %76 = vector.shape_cast %75 : vector<4x8xf32> to vector<4x8x1xf32>
    %77 = tpu.reciprocal %76 {approx = true} : vector<4x8x1xf32> -> vector<4x8x1xf32>
    %78 = vector.broadcast %77 : vector<4x8x1xf32> to vector<4x8x8xf32>
    %79 = arith.mulf %74, %78 : vector<4x8x8xf32>
    %80 = arith.truncf %79 : vector<4x8x8xf32> to vector<4x8x8xbf16>
    "tpu.trace_start"() <{level = 10 : i32, message = "hqk,hkd->hqd"}> : () -> ()
    %cst_56 = arith.constant dense<0.000000e+00> : vector<4x8x8xf32>
    %81 = tpu.matmul %80, %64, %cst_56 {dimension_numbers = #tpu.dot_dimension_numbers<[2], [1], [1], [2], [0, 0, 0, 1, 1, 2], [0], [0]>} : vector<4x8x8xbf16>, vector<4x8x8xbf16>, vector<4x8x8xf32> -> vector<4x8x8xf32>
    "tpu.trace_stop"() : () -> ()
    %82 = vector.extract_strided_slice %81 {offsets = [0, 0, 0], sizes = [1, 8, 8], strides = [1, 1, 1]} : vector<4x8x8xf32> to vector<1x8x8xf32>
    %83 = vector.shape_cast %82 : vector<1x8x8xf32> to vector<8x8xf32>
    %c0_57 = arith.constant 0 : index
    %c0_58 = arith.constant 0 : index
    %84 = vector.load %arg19[%c0_57, %c0_58] : memref<8x32xf32, #tpu.memory_space<vmem>>, vector<8x8xf32>
    tpu.vector_store %arg19[%c0_57, %c0_58], %83 {strides = array<i32>} : memref<8x32xf32, #tpu.memory_space<vmem>>, vector<8x8xf32>,
    %85 = vector.extract_strided_slice %81 {offsets = [1, 0, 0], sizes = [1, 8, 8], strides = [1, 1, 1]} : vector<4x8x8xf32> to vector<1x8x8xf32>
    %86 = vector.shape_cast %85 : vector<1x8x8xf32> to vector<8x8xf32>
    %c0_59 = arith.constant 0 : index
    %c8 = arith.constant 8 : index
    %87 = vector.load %arg19[%c0_59, %c8] : memref<8x32xf32, #tpu.memory_space<vmem>>, vector<8x8xf32>
    tpu.vector_store %arg19[%c0_59, %c8], %86 {strides = array<i32>} : memref<8x32xf32, #tpu.memory_space<vmem>>, vector<8x8xf32>,
    %88 = vector.extract_strided_slice %81 {offsets = [2, 0, 0], sizes = [1, 8, 8], strides = [1, 1, 1]} : vector<4x8x8xf32> to vector<1x8x8xf32>
    %89 = vector.shape_cast %88 : vector<1x8x8xf32> to vector<8x8xf32>
    %c0_60 = arith.constant 0 : index
    %c16 = arith.constant 16 : index
    %90 = vector.load %arg19[%c0_60, %c16] : memref<8x32xf32, #tpu.memory_space<vmem>>, vector<8x8xf32>
    tpu.vector_store %arg19[%c0_60, %c16], %89 {strides = array<i32>} : memref<8x32xf32, #tpu.memory_space<vmem>>, vector<8x8xf32>,
    %91 = vector.extract_strided_slice %81 {offsets = [3, 0, 0], sizes = [1, 8, 8], strides = [1, 1, 1]} : vector<4x8x8xf32> to vector<1x8x8xf32>
    %92 = vector.shape_cast %91 : vector<1x8x8xf32> to vector<8x8xf32>
    %c0_61 = arith.constant 0 : index
    %c24 = arith.constant 24 : index
    %93 = vector.load %arg19[%c0_61, %c24] : memref<8x32xf32, #tpu.memory_space<vmem>>, vector<8x8xf32>
    tpu.vector_store %arg19[%c0_61, %c24], %92 {strides = array<i32>} : memref<8x32xf32, #tpu.memory_space<vmem>>, vector<8x8xf32>,
    %c0_62 = arith.constant 0 : index
    %c0_63 = arith.constant 0 : index
    %94 = vector.load %arg19[%c0_62, %c0_63] : memref<8x32xf32, #tpu.memory_space<vmem>>, vector<8x32xf32>
    %95 = arith.truncf %94 : vector<8x32xf32> to vector<8x32xbf16>
    %c0_64 = arith.constant 0 : index
    %c0_65 = arith.constant 0 : index
    %96 = vector.load %arg5[%c0_64, %c0_65] : memref<32x32xbf16, #tpu.memory_space<vmem>>, vector<32x32xbf16>
    %cst_66 = arith.constant dense<0.000000e+00> : vector<8x32xf32>
    %97 = tpu.matmul %95, %96, %cst_66 {dimension_numbers = #tpu.dot_dimension_numbers<[1], [0], [0], [1], [0, 0, 1, 1], [], []>} : vector<8x32xbf16>, vector<32x32xbf16>, vector<8x32xf32> -> vector<8x32xf32>
    %c0_67 = arith.constant 0 : index
    %c0_68 = arith.constant 0 : index
    %98 = vector.load %arg6[%c0_67, %c0_68] : memref<1x32xf32, #tpu.memory_space<vmem>>, vector<1x32xf32>
    %99 = vector.broadcast %98 : vector<1x32xf32> to vector<8x32xf32>
    %100 = arith.addf %97, %99 : vector<8x32xf32>
    %101 = arith.addf %1, %100 : vector<8x32xf32>
    %cst_69 = arith.constant dense<0.000000e+00> : vector<8xf32>
    %102 = vector.multi_reduction <add>, %101, %cst_69 [1] : vector<8x32xf32> to vector<8xf32>
    %103 = vector.shape_cast %102 : vector<8xf32> to vector<8x1xf32>
    %cst_70 = arith.constant 3.200000e+01 : f32
    %104 = vector.broadcast %cst_70 : f32 to vector<8x1xf32>
    %105 = arith.divf %103, %104 : vector<8x1xf32>
    %106 = vector.broadcast %105 : vector<8x1xf32> to vector<8x32xf32>
    %107 = arith.subf %101, %106 : vector<8x32xf32>
    %108 = arith.mulf %107, %107 : vector<8x32xf32>
    %cst_71 = arith.constant dense<0.000000e+00> : vector<8xf32>
    %109 = vector.multi_reduction <add>, %108, %cst_71 [1] : vector<8x32xf32> to vector<8xf32>
    %110 = vector.shape_cast %109 : vector<8xf32> to vector<8x1xf32>
    %cst_72 = arith.constant 3.200000e+01 : f32
    %111 = vector.broadcast %cst_72 : f32 to vector<8x1xf32>
    %112 = arith.divf %110, %111 : vector<8x1xf32>
    %113 = vector.broadcast %105 : vector<8x1xf32> to vector<8x32xf32>
    %114 = arith.subf %101, %113 : vector<8x32xf32>
    %cst_73 = arith.constant 9.99999974E-6 : f32
    %115 = vector.broadcast %cst_73 : f32 to vector<8x1xf32>
    %116 = arith.addf %112, %115 : vector<8x1xf32>
    %117 = math.rsqrt %116 : vector<8x1xf32>
    %118 = vector.broadcast %117 : vector<8x1xf32> to vector<8x32xf32>
    %119 = arith.mulf %114, %118 : vector<8x32xf32>
    %c0_74 = arith.constant 0 : index
    %c0_75 = arith.constant 0 : index
    %120 = vector.load %arg7[%c0_74, %c0_75] : memref<1x32xf32, #tpu.memory_space<vmem>>, vector<1x32xf32>
    %121 = vector.broadcast %120 : vector<1x32xf32> to vector<8x32xf32>
    %122 = arith.mulf %119, %121 : vector<8x32xf32>
    %c0_76 = arith.constant 0 : index
    %c0_77 = arith.constant 0 : index
    %123 = vector.load %arg8[%c0_76, %c0_77] : memref<1x32xf32, #tpu.memory_space<vmem>>, vector<1x32xf32>
    %124 = vector.broadcast %123 : vector<1x32xf32> to vector<8x32xf32>
    %125 = arith.addf %122, %124 : vector<8x32xf32>
    %126 = arith.truncf %125 : vector<8x32xf32> to vector<8x32xbf16>
    %c0_78 = arith.constant 0 : index
    %c0_79 = arith.constant 0 : index
    %127 = vector.load %arg9[%c0_78, %c0_79] : memref<32x64xbf16, #tpu.memory_space<vmem>>, vector<32x64xbf16>
    %cst_80 = arith.constant dense<0.000000e+00> : vector<8x64xf32>
    %128 = tpu.matmul %126, %127, %cst_80 {dimension_numbers = #tpu.dot_dimension_numbers<[1], [0], [0], [1], [0, 0, 1, 1], [], []>} : vector<8x32xbf16>, vector<32x64xbf16>, vector<8x64xf32> -> vector<8x64xf32>
    %c0_81 = arith.constant 0 : index
    %c0_82 = arith.constant 0 : index
    %129 = vector.load %arg10[%c0_81, %c0_82] : memref<1x64xf32, #tpu.memory_space<vmem>>, vector<1x64xf32>
    %130 = vector.broadcast %129 : vector<1x64xf32> to vector<8x64xf32>
    %131 = arith.addf %128, %130 : vector<8x64xf32>
    %cst_83 = arith.constant 0.000000e+00 : f32
    %132 = vector.broadcast %cst_83 : f32 to vector<8x64xf32>
    %133 = arith.maximumf %131, %132 : vector<8x64xf32>
    %134 = arith.truncf %133 : vector<8x64xf32> to vector<8x64xbf16>
    %c0_84 = arith.constant 0 : index
    %c0_85 = arith.constant 0 : index
    %135 = vector.load %arg11[%c0_84, %c0_85] : memref<64x32xbf16, #tpu.memory_space<vmem>>, vector<64x32xbf16>
    %cst_86 = arith.constant dense<0.000000e+00> : vector<8x32xf32>
    %136 = tpu.matmul %134, %135, %cst_86 {dimension_numbers = #tpu.dot_dimension_numbers<[1], [0], [0], [1], [0, 0, 1, 1], [], []>} : vector<8x64xbf16>, vector<64x32xbf16>, vector<8x32xf32> -> vector<8x32xf32>
    %c0_87 = arith.constant 0 : index
    %c0_88 = arith.constant 0 : index
    %137 = vector.load %arg12[%c0_87, %c0_88] : memref<1x32xf32, #tpu.memory_space<vmem>>, vector<1x32xf32>
    %138 = vector.broadcast %137 : vector<1x32xf32> to vector<8x32xf32>
    %139 = arith.addf %136, %138 : vector<8x32xf32>
    %140 = arith.addf %125, %139 : vector<8x32xf32>
    %cst_89 = arith.constant dense<0.000000e+00> : vector<8xf32>
    %141 = vector.multi_reduction <add>, %140, %cst_89 [1] : vector<8x32xf32> to vector<8xf32>
    %142 = vector.shape_cast %141 : vector<8xf32> to vector<8x1xf32>
    %cst_90 = arith.constant 3.200000e+01 : f32
    %143 = vector.broadcast %cst_90 : f32 to vector<8x1xf32>
    %144 = arith.divf %142, %143 : vector<8x1xf32>
    %145 = vector.broadcast %144 : vector<8x1xf32> to vector<8x32xf32>
    %146 = arith.subf %140, %145 : vector<8x32xf32>
    %147 = arith.mulf %146, %146 : vector<8x32xf32>
    %cst_91 = arith.constant dense<0.000000e+00> : vector<8xf32>
    %148 = vector.multi_reduction <add>, %147, %cst_91 [1] : vector<8x32xf32> to vector<8xf32>
    %149 = vector.shape_cast %148 : vector<8xf32> to vector<8x1xf32>
    %cst_92 = arith.constant 3.200000e+01 : f32
    %150 = vector.broadcast %cst_92 : f32 to vector<8x1xf32>
    %151 = arith.divf %149, %150 : vector<8x1xf32>
    %152 = vector.broadcast %144 : vector<8x1xf32> to vector<8x32xf32>
    %153 = arith.subf %140, %152 : vector<8x32xf32>
    %cst_93 = arith.constant 9.99999974E-6 : f32
    %154 = vector.broadcast %cst_93 : f32 to vector<8x1xf32>
    %155 = arith.addf %151, %154 : vector<8x1xf32>
    %156 = math.rsqrt %155 : vector<8x1xf32>
    %157 = vector.broadcast %156 : vector<8x1xf32> to vector<8x32xf32>
    %158 = arith.mulf %153, %157 : vector<8x32xf32>
    %c0_94 = arith.constant 0 : index
    %c0_95 = arith.constant 0 : index
    %159 = vector.load %arg13[%c0_94, %c0_95] : memref<1x32xf32, #tpu.memory_space<vmem>>, vector<1x32xf32>
    %160 = vector.broadcast %159 : vector<1x32xf32> to vector<8x32xf32>
    %161 = arith.mulf %158, %160 : vector<8x32xf32>
    %c0_96 = arith.constant 0 : index
    %c0_97 = arith.constant 0 : index
    %162 = vector.load %arg14[%c0_96, %c0_97] : memref<1x32xf32, #tpu.memory_space<vmem>>, vector<1x32xf32>
    %163 = vector.broadcast %162 : vector<1x32xf32> to vector<8x32xf32>
    %164 = arith.addf %161, %163 : vector<8x32xf32>
    %c0_98 = arith.constant 0 : index
    %c0_99 = arith.constant 0 : index
    %c0_100 = arith.constant 0 : index
    %165 = vector.load %arg15[%c0_98, %c0_99, %c0_100] : memref<1x8x32xf32, #tpu.memory_space<vmem>>, vector<1x8x32xf32>
    %166 = vector.shape_cast %165 : vector<1x8x32xf32> to vector<8x32xf32>
    %167 = vector.shape_cast %164 : vector<8x32xf32> to vector<1x8x32xf32>
    tpu.vector_store %arg15[%c0_98, %c0_99, %c0_100], %167 {strides = array<i32>} : memref<1x8x32xf32, #tpu.memory_space<vmem>>, vector<1x8x32xf32>,
    return
  }
  func.func @transform_0(%arg0: i32) -> (i32, i32, i32) {
    %c0_i32 = arith.constant 0 : i32
    %c0_i32_0 = arith.constant 0 : i32
    %c0_i32_1 = arith.constant 0 : i32
    return %arg0, %c0_i32, %c0_i32_0 : i32, i32, i32
  }
  func.func @transform_1(%arg0: i32) -> (i32, i32, i32) {
    %c0_i32 = arith.constant 0 : i32
    %c0_i32_0 = arith.constant 0 : i32
    %c0_i32_1 = arith.constant 0 : i32
    return %arg0, %c0_i32, %c0_i32_0 : i32, i32, i32
  }
  func.func @transform_2(%arg0: i32) -> (i32, i32) {
    %c0_i32 = arith.constant 0 : i32
    %c0_i32_0 = arith.constant 0 : i32
    %c0_i32_1 = arith.constant 0 : i32
    return %c0_i32, %c0_i32_0 : i32, i32
  }
  func.func @transform_3(%arg0: i32) -> (i32, i32) {
    %c0_i32 = arith.constant 0 : i32
    %c0_i32_0 = arith.constant 0 : i32
    %c0_i32_1 = arith.constant 0 : i32
    return %c0_i32, %c0_i32_0 : i32, i32
  }
  func.func @transform_4(%arg0: i32) -> (i32, i32) {
    %c0_i32 = arith.constant 0 : i32
    %c0_i32_0 = arith.constant 0 : i32
    %c0_i32_1 = arith.constant 0 : i32
    return %c0_i32, %c0_i32_0 : i32, i32
  }
  func.func @transform_5(%arg0: i32) -> (i32, i32) {
    %c0_i32 = arith.constant 0 : i32
    %c0_i32_0 = arith.constant 0 : i32
    %c0_i32_1 = arith.constant 0 : i32
    return %c0_i32, %c0_i32_0 : i32, i32
  }
  func.func @transform_6(%arg0: i32) -> (i32, i32) {
    %c0_i32 = arith.constant 0 : i32
    %c0_i32_0 = arith.constant 0 : i32
    %c0_i32_1 = arith.constant 0 : i32
    return %c0_i32, %c0_i32_0 : i32, i32
  }
  func.func @transform_7(%arg0: i32) -> (i32, i32) {
    %c0_i32 = arith.constant 0 : i32
    %c0_i32_0 = arith.constant 0 : i32
    %c0_i32_1 = arith.constant 0 : i32
    return %c0_i32, %c0_i32_0 : i32, i32
  }
  func.func @transform_8(%arg0: i32) -> (i32, i32) {
    %c0_i32 = arith.constant 0 : i32
    %c0_i32_0 = arith.constant 0 : i32
    %c0_i32_1 = arith.constant 0 : i32
    return %c0_i32, %c0_i32_0 : i32, i32
  }
  func.func @transform_9(%arg0: i32) -> (i32, i32) {
    %c0_i32 = arith.constant 0 : i32
    %c0_i32_0 = arith.constant 0 : i32
    %c0_i32_1 = arith.constant 0 : i32
    return %c0_i32, %c0_i32_0 : i32, i32
  }
  func.func @transform_10(%arg0: i32) -> (i32, i32) {
    %c0_i32 = arith.constant 0 : i32
    %c0_i32_0 = arith.constant 0 : i32
    %c0_i32_1 = arith.constant 0 : i32
    return %c0_i32, %c0_i32_0 : i32, i32
  }
  func.func @transform_11(%arg0: i32) -> (i32, i32) {
    %c0_i32 = arith.constant 0 : i32
    %c0_i32_0 = arith.constant 0 : i32
    %c0_i32_1 = arith.constant 0 : i32
    return %c0_i32, %c0_i32_0 : i32, i32
  }
  func.func @transform_12(%arg0: i32) -> (i32, i32) {
    %c0_i32 = arith.constant 0 : i32
    %c0_i32_0 = arith.constant 0 : i32
    %c0_i32_1 = arith.constant 0 : i32
    return %c0_i32, %c0_i32_0 : i32, i32
  }
  func.func @transform_13(%arg0: i32) -> (i32, i32) {
    %c0_i32 = arith.constant 0 : i32
    %c0_i32_0 = arith.constant 0 : i32
    %c0_i32_1 = arith.constant 0 : i32
    return %c0_i32, %c0_i32_0 : i32, i32
  }
  func.func @transform_14(%arg0: i32) -> (i32, i32, i32) {
    %c0_i32 = arith.constant 0 : i32
    %c0_i32_0 = arith.constant 0 : i32
    %c0_i32_1 = arith.constant 0 : i32
    return %arg0, %c0_i32, %c0_i32_0 : i32, i32, i32
  }
}

</mosaic_0001>

<bundles_post_ra>
// kernel: tpu_custom_call.1
= control target key start
LH: loop header
LB: loop body
LE: loop exit
PB: predicated region body
PF: predicated region fallthrough
CT: control target
= control target key end

     0   :  { %s1849_s0 = inlined_call_operand.vmem [shape: f32[2,8,32], index: 0, kind: input, shape index: {}]   ;;  %s1850_s1 = inlined_call_operand.hbm [shape: f32[2,1,8], index: 1, kind: input, shape index: {}]   ;;  %s1851_s2 = inlined_call_operand.vmem [shape: bf16[32,96], index: 2, kind: input, shape index: {}]   ;;  %s1852_s3 = inlined_call_operand.vmem [shape: f32[1,96], index: 3, kind: input, shape index: {}]   ;;  %s1853_s4 = inlined_call_operand.vmem [shape: bf16[32,32], index: 4, kind: input, shape index: {}]   ;;  %s1854_s5 = inlined_call_operand.vmem [shape: f32[1,32], index: 5, kind: input, shape index: {}]   ;;  %s1855_s6 = inlined_call_operand.vmem [shape: f32[1,32], index: 6, kind: input, shape index: {}]   ;;  %s1856_s7 = inlined_call_operand.vmem [shape: f32[1,32], index: 7, kind: input, shape index: {}]   ;;  %s1857_s8 = inlined_call_operand.hbm [shape: bf16[32,64], index: 8, kind: input, shape index: {}]   ;;  %s1858_s9 = inlined_call_operand.vmem [shape: f32[1,64], index: 9, kind: input, shape index: {}]   ;;  %s1859_s10 = inlined_call_operand.vmem [shape: bf16[64,32], index: 10, kind: input, shape index: {}]   ;;  %s1860_s11 = inlined_call_operand.vmem [shape: f32[1,32], index: 11, kind: input, shape index: {}]   ;;  %s1861_s12 = inlined_call_operand.vmem [shape: f32[1,32], index: 12, kind: input, shape index: {}]   ;;  %s1862_s13 = inlined_call_operand.vmem [shape: f32[1,32], index: 13, kind: input, shape index: {}]   ;;  %s1863_s14 = inlined_call_operand.hbm [shape: f32[2,8,32], index: 14, kind: output, shape index: {}]  }
   0x1   :  { %1869 = sst [smem:[#allocation20_spill]] %s1857_s8 }
   0x2   :  { %1870 = sst [smem:[#allocation21_spill]] %s1862_s13 }
   0x3   :  { %19 = vsyncpa [#allocation7], 0 }
   0x4   :  { %21 = vsyncpa [#allocation7 + $0x1], 0 }
   0x5   :  { %22 = vsyncpa [#allocation10], 0 }
   0x6   :  { %23 = vsyncpa [#allocation8], 0 }
   0x7   :  { %25 = vsyncpa [#allocation8 + $0x1], 0  ;;  %s1577_s29 = smov 0   ;;  %s1579_s30 = smov 0  }
   0x8   :  { %s1581_s15 = smov 0   ;;  %s1583_s16 = smov 0  }
   0x9 LB: > { %1871 = sst [smem:[#allocation15_spill]] %s1469_s29  ;;  %s1601_s20 = sadd.s32 4294967295, %s1481_s16   ;;  %s1481_s16 = sphi %s1583_s16, %s1888_s16   ;;  %s1477_s15 = sphi %s1581_s15, %s1890_s15   ;;  %s1473_s30 = sphi %s1579_s30, %s1892_s30   ;;  %s1469_s29 = sphi %s1577_s29, %s1891_s29  }
   0xa   : > { %1872 = sst [smem:[#allocation16_spill]] %s1477_s15  ;;  %p1173_p0 = scmp.ge.s32.totalorder %s1481_s16, 1 }
   0xb   : > { %1873 = sst [smem:[#allocation17_spill]] %s1481_s16  ;;  %p78_p1 = scmp.eq.s32.totalorder %s1601_s20, 0 }
   0xc   : > { %s1874_s8 = sld [smem:[#allocation20_spill]]  ;;  %p366_p2 = scmp.lt.s32.totalorder %s1481_s16, 3 }
   0xd   : > { %s1483_s22 = smov [#allocation9]   ;;  %s1484_s24 = smov 64  }
   0xe   : > { %p1606_p3 = pnand %p1173_p0, %p366_p2  ;;  %s397_s23 = sshll.u32 %s1483_s22, 4  ;;  %s398_s23 = int_to_ptr.vmem [resolvable:$true] %s397_s23 }
   0xf   : > { %s1485_s25 = smov 4   ;;  %s1172_s26 = sadd.s32 4294967294, %s1481_s16  }
  0x10   : > { %p1254_p4 = pneg %p1606_p3  ;;  %s1617_s27 = sadd.s32 1, %s1481_s16  }
  0x11   : > { %1876 = sst [smem:[#allocation18_spill]] %s1617_s27  ;;  %s64_s28 = sadd.s32 1, %s1477_s15 }
  0x12   : > { %s395_s19 = sshll.u32 %s1874_s8, 4  ;;  %p1255_p6 = pnand %p1254_p4, %p78_p1  ;;  %s396_s19 = int_to_ptr.hbm [resolvable:$true] %s395_s19 }
  0x13   : > { %s61_s17 = ssub.s32 %s1481_s16, %s1617_s27  ;;  %p71_p7 = scmp.ne.s32.totalorder %s1477_s15, %s1473_s30 }
  0x14   : > { %1257 = dma.hbm_to_vmem [thread:$0]  (!%p1255_p6), %s396_s19, 256, %s398_s23, [#allocation10], %s1484_s24, %s1484_s24, %s1485_s25  }
  0x15   : > { %p62_p8 = scmp.eq.s32.totalorder %s61_s17, 0  ;;  %p72_p9 = scmp.eq.s32.totalorder %s1481_s16, 0 }
  0x16   : > { %p77_p10 = scmp.ne.s32.totalorder %s1473_s30, %s1469_s29  ;;  %p353_p11 = scmp.eq.s32.totalorder %s1601_s20, 1 }
  0x17   : > { %s1629_s18 = scalar_select %p62_p8, %s1477_s15, %s64_s28  }
  0x18   : > { %p1633_p12 = por %p78_p1, %p77_p10  ;;  %p1637_p13 = por %p353_p11, %p71_p7 }
  0x19   : > { %1877 = sst [smem:[#allocation19_spill]] %s1629_s18  ;;  %p359_p0 = scmp.eq.s32.totalorder %s1172_s26, 1 }
  0x1a   : > { %p73_p2 = por %p72_p9, %p71_p7  ;;  %s433_s23 = sand.u32 1, %s1477_s15  }
  0x1b   : > { %p1642_p4 = por %p359_p0, %p77_p10  ;;  %p1267_p6 = scmp.lt.s32.totalorder %s1481_s16, 2 }
  0x1c   : > { %s439_s17 = scalar_lea.hbm %s1850_s1, %s1481_s16  ;;  %s436_s18 = scalar_lea.vmem [#allocation6], %s433_s23 }
  0x1d   : > { %s441_s8 = sshll.u32 %s439_s17, 4  ;;  %s443_s27 = sshll.u32 %s436_s18, 4  ;;  %s442_s8 = int_to_ptr.hbm [resolvable:$true] %s441_s8  ;;  %s444_s27 = int_to_ptr.vmem [resolvable:$true] %s443_s27 }
  0x1e   : > { %p1651_p8 = pnand %p1267_p6, %p73_p2  ;;  %s434_s26 = scalar_lea.sflag [#allocation7], %s433_s23 }
  0x1f   : > { %s1381_s15 = sshra.s32 %s442_s8, 4  ;;  %s1388_s18 = scalar_lea.hbm %s1850_s1, 2  ;;  %s1382_s15 = int_to_ptr.hbm [resolvable:$true] %s1381_s15 }
  0x20   : > { %s1383_s13 = scalar_lea.hbm %s1382_s15, 1  ;;  %p1385_p9 = pneg %p1651_p8 }
  0x21   : > { %p1384_p7 = scmp.ne.s32.totalorder %s1382_s15, %s1383_s13  ;;  %p1389_p0 = scmp.lt.s32.totalorder %s1382_s15, %s1850_s1 }
  0x22   : > { %p1390_p2 = scmp.lt.s32.totalorder %s1388_s18, %s1383_s13 }
  0x23   : > { %p1386_p10 = pnand %p1385_p9, %p1384_p7 }
  0x24   : > { %p1391_p6 = por %p1390_p2, %p1389_p0 }
  0x25   : > { %p1387_p11 = pneg %p1386_p10 }
  0x27   : > { %p1392_p5 = pnand %p1391_p6, %p1387_p11 }
  0x29   : > { %1395 = shalt.err (!%p1392_p5)
}
  0x2a   : > { %1261 = dma.hbm_to_vmem [thread:$0]  (!%p1651_p8), %s442_s8, 16, %s444_s27, %s434_s26  }
  0x2b   : > { %452 = sbr.rel (%p1606_p3) target bundleno = 1937 (0x791), region = 76  ;;  %s1668_s23 = sand.u32 (!%p1606_p3), 1, %s1473_s30  }
  0x2c   : > { %s455_s25 = scalar_lea.sflag (!%p1606_p3), [#allocation7], %s1668_s23  ;;  %s457_s28 = scalar_lea.vmem (!%p1606_p3), [#allocation6], %s1668_s23 }
  0x30   : > { %1456 = dma.done.wait (%p1633_p12), %s455_s25, 16  }
  0x31   : > { %1458 = vsyncadd (%p1633_p12), %s455_s25, 4294967280 }
  0x32   : > { %1460 = dma.done.wait (%p78_p1), [#allocation10], 256  }
  0x33   : > { %1462 = vsyncadd (%p78_p1), [#allocation10], 4294967040  ;;  %p511_p3 = scmp.lt.s32.totalorder %s1601_s20, 1  ;;  %v1237_v0 = vld [vmem:[%s1851_s2 + $0x8] sm:$0xff]  ;;  %v1236_v1 = vld [vmem:[%s1851_s2] sm:$0xff]  ;;  %vm540_vm0 = vcmask 261120  }
  0x34   : > { %550 = vmatpush.bf16.msra.mxu0 %v1237_v0  ;;  %v1321_v4 = vld [vmem:[%s1852_s3] ss:$0 sm:$0xff]  ;;  %vm557_vm1 = vcmask 64512   ;;  %s1486_s25 = smov 72   ;;  %s1489_s29 = smov 104   ;;  %v1493_v36 = vmov 0  }
  0x35   : > { %s512_s8 = scalar_select %p511_p3, %s1601_s20, 1  ;;  %v518_v35 = vld [vmem:[%s457_s28] sm:$0x1]  ;;  %vm771_vm4 = vcmask 1043456   ;;  %vm850_vm5 = vcmask 130112   ;;  %vm856_vm6 = vcmask 195712  }
  0x36   : > { %s1490_s15 = smov 112   ;;  %s1492_s21 = smov 96   ;;  %vm519_vm2 = vcmp.ne.f32.partialorder %v518_v35, 0.0  ;;  %vm862_vm7 = vcmask 261312   ;;  %vm1017_vm12 = vcmask 523264  }
  0x37   : > { %s1179_s13 = sshll.u32 %s512_s8, 3  ;;  %s1487_s8 = smov 120   ;;  %v713_v37 = vsel %vm519_vm2, 1, %v1493_v36 }
  0x38   : > { %s514_s16 = scalar_lea.vmem %s1849_s0, %s1179_s13  ;;  %551 = vmatpush.bf16.msra.mxu0 %v1236_v1  ;;  %s1488_s13 = smov 88   ;;  %v714_v38 = vperm.slane %v713_v37, 0 }
  0x39   : > { %v1691_v2 = vld [vmem:[%s514_s16] sm:$0xff]  ;;  %s1491_s16 = smov 80   ;;  %s1494_s28 = smov 56  }
  0x3a   : > { %v517_v3 = vpack.c.bf16 %v1691_v2, %v1691_v2  ;;  %vm1727_vm3 = vcmp.eq.s32.totalorder %v714_v38, 1  ;;  %s1495_s27 = smov 48   ;;  %s1496_s22 = smov 64  }
  0x3b   : > { %s1497_s26 = smov 40   ;;  %s1498_s18 = smov 8  }
  0x3c   : > { %1188 = vmatmul.msk.bf16.vlgmr.msra.gmra.mxu0 %vm540_vm0, %v517_v3  ;;  %s1499_s17 = smov 16  }
  0xb9   : > { %v553_v5 = vpop.f32.mrf.mxu0 }
  0xba   : > { %v1699_v6 = vadd.f32 %v1321_v4, %v553_v5 }
  0xbc   : > { %603 = vrot.lane.b32.xlu2 %v1699_v6, %s1486_s25  ;;  %568 = vrot.lane.b32.xlu1 %v1699_v6, %s1487_s8  ;;  %558 = vst.msk [vmem:[#allocation2] sm:$0xff] %vm557_vm1, %v1699_v6  ;;  %s1500_s25 = smov 24  }
  0xbd   : > { %573 = vrot.lane.b32.xlu0 %v1699_v6, %s1488_s13 }
  0xc1   : > { %v555_v7 = vpop.f32.mrf.mxu0 }
  0xc3   : > { %v613_v33 = vld [vmem:[#allocation2] sm:$0xff] }
  0xc4   : > { %598 = vrot.lane.b32.xlu2 %v1699_v6, %s1489_s29  ;;  %583 = vrot.lane.b32.xlu1 %v1699_v6, %s1490_s15  ;;  %v617_v34 = vpack.c.bf16 %v613_v33, %v613_v33 }
  0xc5   : > { %588 = vrot.lane.b32.xlu0 %v1699_v6, %s1491_s16 }
  0xcd   : > { %560 = vrot.lane.b32.xlu0 %v1699_v6, %s1492_s21  ;;  %s1884_s21 = sld [smem:[#allocation21_spill]] }
 0x116   : > { %v604_v8 = vpop.permute.xlu2 %603 }
 0x117   : > { %607 = vst.msk [vmem:[#allocation3 + $0x18] sm:$0xff] %vm557_vm1, %v604_v8 }
 0x11e   : > { %v599_v9 = vpop.permute.xlu2 %598  ;;  %v624_v10 = vld [vmem:[#allocation3 + $0x18] sm:$0xff] }
 0x11f   : > { %602 = vst.msk [vmem:[#allocation2 + $0x18] sm:$0xff] %vm557_vm1, %v599_v9  ;;  %v628_v11 = vpack.c.bf16 %v624_v10, %v624_v10 }
 0x121   : > { %v698_v12 = vsel %vm557_vm1, %v628_v11, 0 }
 0x122   : > { %707 = vmatpush.bf16.xpose.msrb.mxu0 %v698_v12 }
 0x126   : > { %v616_v13 = vld [vmem:[#allocation2 + $0x18] sm:$0xff] }
 0x127   : > { %v620_v14 = vpack.c.bf16 %v616_v13, %v616_v13 }
 0x129   : > { %1192 = vmatmul.msk.bf16.vlgmr.msrb.gmra.mxu0 %vm557_vm1, %v620_v14 }
 0x12e   : > { %v569_v15 = vpop.permute.xlu1 %568 }
 0x12f   : > { %572 = vst.msk [vmem:[#allocation2 + $0x8] sm:$0xff] %vm557_vm1, %v569_v15  ;;  %v574_v16 = vpop.permute.xlu0 %573 }
 0x130   : > { %577 = vst.msk [vmem:[#allocation3 + $0x8] sm:$0xff] %vm557_vm1, %v574_v16 }
 0x136   : > { %v584_v17 = vpop.permute.xlu1 %583  ;;  %v614_v22 = vld [vmem:[#allocation2 + $0x8] sm:$0xff] }
 0x137   : > { %587 = vst.msk [vmem:[#allocation2 + $0x10] sm:$0xff] %vm557_vm1, %v584_v17  ;;  %v589_v18 = vpop.permute.xlu0 %588  ;;  %v622_v19 = vld [vmem:[#allocation3 + $0x8] sm:$0xff]  ;;  %v618_v25 = vpack.c.bf16 %v614_v22, %v614_v22 }
 0x138   : > { %592 = vst.msk [vmem:[#allocation3 + $0x10] sm:$0xff] %vm557_vm1, %v589_v18  ;;  %v626_v20 = vpack.c.bf16 %v622_v19, %v622_v19 }
 0x13a   : > { %v660_v21 = vsel %vm557_vm1, %v626_v20, 0 }
 0x13b   : > { %669 = vmatpush.bf16.xpose.msra.mxu2 %v660_v21 }
 0x13e   : > { %v615_v28 = vld [vmem:[#allocation2 + $0x10] sm:$0xff] }
 0x13f   : > { %v561_v23 = vpop.permute.xlu0 %560  ;;  %v623_v24 = vld [vmem:[#allocation3 + $0x10] sm:$0xff]  ;;  %v619_v30 = vpack.c.bf16 %v615_v28, %v615_v28 }
 0x140   : > { %563 = vst.msk [vmem:[#allocation3] sm:$0xff] %vm557_vm1, %v561_v23  ;;  %v627_v26 = vpack.c.bf16 %v623_v24, %v623_v24 }
 0x142   : > { %1190 = vmatmul.msk.bf16.vlgmr.msra.gmra.mxu2 %vm557_vm1, %v618_v25  ;;  %v679_v27 = vsel %vm557_vm1, %v627_v26, 0 }
 0x143   : > { %688 = vmatpush.bf16.xpose.msra.mxu3 %v679_v27 }
 0x147   : > { %v621_v29 = vld [vmem:[#allocation3] sm:$0xff] }
 0x148   : > { %v625_v31 = vpack.c.bf16 %v621_v29, %v621_v29 }
 0x14a   : > { %1191 = vmatmul.msk.bf16.vlgmr.msra.gmra.mxu3 %vm557_vm1, %v619_v30  ;;  %v641_v32 = vsel %vm557_vm1, %v625_v31, 0 }
 0x14b   : > { %650 = vmatpush.bf16.xpose.msra.mxu1 %v641_v32 }
 0x152   : > { %1189 = vmatmul.msk.bf16.vlgmr.msra.gmra.mxu1 %vm557_vm1, %v617_v34 }
 0x1a6   : > { %v709_v40 = vpop.f32.mrf.mxu0 }
 0x1a7   : > { %v719_v41 = vsel %vm1727_vm3, %v709_v40, -1e+10 }
 0x1a8   : > { %v729_v42 = vsel %vm557_vm1, %v719_v41, -inf }
 0x1a9   : > { %730 = vmax.xlane.f32.xlu0 %v729_v42 }
 0x1ae   : > { %v711_v43 = vpop.f32.mrf.mxu0 }
 0x1c5   : > { %v671_v44 = vpop.f32.mrf.mxu2 }
 0x1c6   : > { %v717_v45 = vsel %vm1727_vm3, %v671_v44, -1e+10 }
 0x1c7   : > { %v723_v46 = vsel %vm557_vm1, %v717_v45, -inf }
 0x1c8   : > { %724 = vmax.xlane.f32.xlu1 %v723_v46 }
 0x1cd   : > { %v673_v47 = vpop.f32.mrf.mxu2  ;;  %v690_v48 = vpop.f32.mrf.mxu3 }
 0x1ce   : > { %v718_v49 = vsel %vm1727_vm3, %v690_v48, -1e+10 }
 0x1cf   : > { %v652_v50 = vpop.f32.mrf.mxu1  ;;  %v726_v51 = vsel %vm557_vm1, %v718_v49, -inf }
 0x1d0   : > { %727 = vmax.xlane.f32.xlu2 %v726_v51  ;;  %v716_v52 = vsel %vm1727_vm3, %v652_v50, -1e+10 }
 0x1d1   : > { %v720_v55 = vsel %vm557_vm1, %v716_v52, -inf }
 0x1d5   : > { %v692_v53 = vpop.f32.mrf.mxu3 }
 0x1d6   : > { %v1239_v53 = vld [vmem:[%s1853_s4 + $0x8] sm:$0xff] }
 0x1d7   : > { %v654_v54 = vpop.f32.mrf.mxu1 }
 0x1d8   : > { %721 = vmax.xlane.f32.xlu2 %v720_v55  ;;  %v1238_v54 = vld [vmem:[%s1853_s4] sm:$0xff] }
 0x1e1   : > { %578 = vrot.lane.b32.xlu1 %v1699_v6, %s1494_s28 }
 0x1f0   : > { %593 = vrot.lane.b32.xlu2 %v1699_v6, %s1495_s27 }
 0x1f8   : > { %564 = vrot.lane.b32.xlu2 %v1699_v6, %s1496_s22  ;;  %s1069_s22 = scalar_lea.sflag [#allocation8], %s1668_s23 }
 0x21c   : > { %v731_v56 = vpop.xlane.xlu0 %730 }
 0x21d   : > { %v735_v57 = vsub.f32 %v719_v41, %v731_v56 }
 0x21f   : > { %v742_v58 = vmul.f32 1.442695, %v735_v57 }
 0x221   : > { %1329 = vpow2.f32 %v742_v58 }
 0x227   : > { %v1746_v59 = vpop.eup %1329 }
 0x228   : > { %v753_v60 = vsel %vm557_vm1, %v1746_v59, 0.0 }
 0x229   : > { %754 = vadd.xlane.f32.xlu1 %v753_v60  ;;  %v1322_v60 = vld [vmem:[%s1854_s5] ss:$0 sm:$0xff] }
 0x23b   : > { %v725_v61 = vpop.xlane.xlu1 %724 }
 0x23c   : > { %v733_v62 = vsub.f32 %v717_v45, %v725_v61 }
 0x23e   : > { %v738_v63 = vmul.f32 1.442695, %v733_v62 }
 0x240   : > { %1331 = vpow2.f32 %v738_v63 }
 0x243   : > { %v728_v0 = vpop.xlane.xlu2 %727 }
 0x244   : > { %v734_v1 = vsub.f32 %v718_v49, %v728_v0 }
 0x246   : > { %v1332_v3 = vpop.eup %1331  ;;  %v740_v4 = vmul.f32 1.442695, %v734_v1 }
 0x247   : > { %v747_v5 = vsel %vm557_vm1, %v1332_v3, 0.0 }
 0x248   : > { %1333 = vpow2.f32 %v740_v4  ;;  %748 = vadd.xlane.f32.xlu0 %v747_v5 }
 0x24b   : > { %v722_v7 = vpop.xlane.xlu2 %721 }
 0x24c   : > { %v732_v8 = vsub.f32 %v716_v52, %v722_v7 }
 0x24e   : > { %v1334_v9 = vpop.eup %1333  ;;  %v736_v10 = vmul.f32 1.442695, %v732_v8 }
 0x24f   : > { %v750_v11 = vsel %vm557_vm1, %v1334_v9, 0.0 }
 0x250   : > { %1335 = vpow2.f32 %v736_v10  ;;  %751 = vadd.xlane.f32.xlu0 %v750_v11 }
 0x253   : > { %v579_v12 = vpop.permute.xlu1 %578  ;;  %v594_v13 = vpop.permute.xlu2 %593 }
 0x254   : > { %582 = vst.msk [vmem:[#allocation4 + $0x8] sm:$0xff] %vm557_vm1, %v579_v12 }
 0x255   : > { %597 = vst.msk [vmem:[#allocation4 + $0x10] sm:$0xff] %vm557_vm1, %v594_v13 }
 0x256   : > { %v1336_v14 = vpop.eup %1335 }
 0x257   : > { %v744_v15 = vsel %vm557_vm1, %v1336_v14, 0.0 }
 0x258   : > { %745 = vadd.xlane.f32.xlu2 %v744_v15 }
 0x25b   : > { %v565_v16 = vpop.permute.xlu2 %564  ;;  %v630_v17 = vld [vmem:[#allocation4 + $0x8] sm:$0xff] }
 0x25c   : > { %567 = vst.msk [vmem:[#allocation4] sm:$0xff] %vm557_vm1, %v565_v16  ;;  %v634_v18 = vpack.c.bf16 %v630_v17, %v630_v17  ;;  %v631_v19 = vld [vmem:[#allocation4 + $0x10] sm:$0xff]  ;;  %v1245_v17 = vld [vmem:[%s1859_s10 + $0x18] sm:$0xff] }
 0x25d   : > { %v635_v20 = vpack.c.bf16 %v631_v19, %v631_v19  ;;  %v1240_v16 = vld [vmem:[#allocation9] sm:$0xff] }
 0x25e   : > { %v792_v21 = vsel %vm771_vm4, %v634_v18, 0 }
 0x25f   : > { %801 = vmatpush.bf16.msrb.mxu2 %v792_v21  ;;  %v811_v22 = vsel %vm771_vm4, %v635_v20, 0  ;;  %v1244_v20 = vld [vmem:[%s1859_s10 + $0x10] sm:$0xff] }
 0x260   : > { %820 = vmatpush.bf16.msrb.mxu3 %v811_v22 }
 0x263   : > { %v629_v23 = vld [vmem:[#allocation4] sm:$0xff] }
 0x264   : > { %608 = vrot.lane.b32.xlu0 %v1699_v6, %s1497_s26  ;;  %v633_v24 = vpack.c.bf16 %v629_v23, %v629_v23  ;;  %1025 = vmatpush.bf16.msra.mxu3 %v1245_v17  ;;  %s1178_s26 = sshll.u32 %s1668_s23, 3 }
 0x266   : > { %v773_v25 = vsel %vm771_vm4, %v633_v24, 0 }
 0x267   : > { %782 = vmatpush.bf16.msrb.mxu1 %v773_v25 }
 0x268   : > { %1026 = vmatpush.bf16.msra.mxu3 %v1244_v20 }
 0x26b   : > { %895 = vmatpush.bf16.msra.mxu1 %v1239_v53 }
 0x26f   : > { %896 = vmatpush.bf16.msra.mxu1 %v1238_v54 }
 0x29c   : > { %v755_v35 = vpop.xlane.xlu1 %754 }
 0x2bb   : > { %v749_v26 = vpop.xlane.xlu0 %748 }
 0x2bc   : > { %1337 = vrcp.f32 %v749_v26 }
 0x2c2   : > { %v1338_v27 = vpop.eup %1337 }
 0x2c3   : > { %v761_v28 = vmul.f32 %v1338_v27, %v1332_v3  ;;  %v752_v29 = vpop.xlane.xlu0 %751  ;;  %v1501_v3 = vmov 32.0  }
 0x2c4   : > { %1339 = vrcp.f32 %v752_v29 }
 0x2c5   : > { %v765_v30 = vpack.c.bf16 %v761_v28, %v761_v28  ;;  %v1323_v28 = vld [vmem:[%s1855_s6] ss:$0 sm:$0xff] }
 0x2c7   : > { %1194 = vmatmul.msk.bf16.vlgmr.msrb.gmra.mxu2 %vm557_vm1, %v765_v30  ;;  %v1324_v30 = vld [vmem:[%s1856_s7] ss:$0 sm:$0xff] }
 0x2ca   : > { %v1340_v31 = vpop.eup %1339 }
 0x2cb   : > { %v762_v32 = vmul.f32 %v1340_v31, %v1334_v9  ;;  %v746_v33 = vpop.xlane.xlu2 %745 }
 0x2cc   : > { %1341 = vrcp.f32 %v746_v33 }
 0x2cd   : > { %v766_v34 = vpack.c.bf16 %v762_v32, %v762_v32  ;;  %1343 = vrcp.f32 %v755_v35  ;;  %v1242_v35 = vld [vmem:[%s1859_s10] sm:$0xff] }
 0x2ce   : > { %1345 = vrcp.f32 %v1501_v3 }
 0x2cf   : > { %1195 = vmatmul.msk.bf16.vlgmr.msrb.gmra.mxu3 %vm557_vm1, %v766_v34 }
 0x2d2   : > { %v1342_v6 = vpop.eup %1341 }
 0x2d3   : > { %v760_v36 = vmul.f32 %v1342_v6, %v1336_v14  ;;  %v1344_v39 = vpop.eup %1343  ;;  %v1243_v6 = vld [vmem:[%s1859_s10 + $0x8] sm:$0xff] }
 0x2d4   : > { %v763_v41 = vmul.f32 %v1344_v39, %v1746_v59  ;;  %v1346_v4 = vpop.eup %1345  ;;  %1027 = vmatpush.bf16.msra.mxu3 %v1243_v6 }
 0x2d5   : > { %v764_v37 = vpack.c.bf16 %v760_v36, %v760_v36  ;;  %v907_v5 = vmul.f32 32.0, %v1346_v4  ;;  %vm911_vm8 = vweird.f32 %v1346_v4  ;;  %v1325_v36 = vld [vmem:[%s1858_s9] ss:$0 sm:$0xff] }
 0x2d6   : > { %v609_v38 = vpop.permute.xlu0 %608  ;;  %v767_v44 = vpack.c.bf16 %v763_v41, %v763_v41 }
 0x2d7   : > { %612 = vst.msk [vmem:[#allocation4 + $0x18] sm:$0xff] %vm557_vm1, %v609_v38  ;;  %1193 = vmatmul.msk.bf16.vlgmr.msrb.gmra.mxu1 %vm557_vm1, %v764_v37  ;;  %v908_v7 = vsub.f32 1.0, %v907_v5 }
 0x2d8   : > { %1028 = vmatpush.bf16.msra.mxu3 %v1242_v35 }
 0x2d9   : > { %v909_v8 = vmul.f32 %v1346_v4, %v908_v7 }
 0x2db   : > { %v910_v9 = vadd.f32 %v1346_v4, %v909_v8 }
 0x2dd   : > { %v912_v10 = vsel %vm911_vm8, %v1346_v4, %v910_v9 }
 0x2de   : > { %v632_v40 = vld [vmem:[#allocation4 + $0x18] sm:$0xff] }
 0x2df   : > { %v636_v42 = vpack.c.bf16 %v632_v40, %v632_v40 }
 0x2e1   : > { %v830_v43 = vsel %vm771_vm4, %v636_v42, 0  ;;  %v1326_v42 = vld [vmem:[%s1860_s11] ss:$0 sm:$0xff] }
 0x2e2   : > { %839 = vmatpush.bf16.msra.mxu0 %v830_v43 }
 0x2e5   : > { %1196 = vmatmul.msk.bf16.vlgmr.msra.gmra.mxu0 %vm557_vm1, %v767_v44 }
 0x34a   : > { %v803_v45 = vpop.f32.mrf.mxu2 }
 0x34b   : > { %847 = vrot.lane.b32.xlu0 %v803_v45, %s1498_s18  ;;  %s1233_s18 = sshll.u32 %s1601_s20, 3  ;;  %s510_s20 = scalar_lea.vmem [#allocation11], %s1178_s26 }
 0x34c   : > { %s1079_s29 = scalar_lea.hbm %s1863_s14, %s1233_s18  ;;  %s1081_s28 = sshll.u32 %s510_s20, 4  ;;  %s1082_s28 = int_to_ptr.vmem [resolvable:$true] %s1081_s28 }
 0x34d   : > { %s1083_s27 = sshll.u32 %s1079_s29, 4  ;;  %s1431_s26 = scalar_lea.hbm %s1863_s14, 16  ;;  %s1084_s27 = int_to_ptr.hbm [resolvable:$true] %s1083_s27 }
 0x352   : > { %v805_v46 = vpop.f32.mrf.mxu2  ;;  %v822_v47 = vpop.f32.mrf.mxu3 }
 0x353   : > { %853 = vrot.lane.b32.xlu0 %v822_v47, %s1499_s17  ;;  %s1425_s17 = sshra.s32 %s1084_s27, 4  ;;  %s1426_s17 = int_to_ptr.hbm [resolvable:$true] %s1425_s17 }
 0x354   : > { %v784_v48 = vpop.f32.mrf.mxu1  ;;  %s1427_s18 = scalar_lea.hbm %s1426_s17, 8  ;;  %p1432_p8 = scmp.lt.s32.totalorder %s1426_s17, %s1863_s14 }
 0x355   : > { %845 = vst.msk [vmem:[#allocation5] sm:$0xff] %vm557_vm1, %v784_v48  ;;  %p1428_p1 = scmp.ne.s32.totalorder %s1426_s17, %s1427_s18  ;;  %p1433_p7 = scmp.lt.s32.totalorder %s1431_s26, %s1427_s18 }
 0x357   : > { %p1429_p5 = pnand %p1428_p1, %p1637_p13  ;;  %p1434_p9 = por %p1433_p7, %p1432_p8 }
 0x359   : > { %p1430_p12 = pneg %p1429_p5 }
 0x35a   : > { %v824_v49 = vpop.f32.mrf.mxu3 }
 0x35b   : > { %p1435_p10 = pnand %p1434_p9, %p1430_p12 }
 0x35c   : > { %v786_v50 = vpop.f32.mrf.mxu1 }
 0x362   : > { %v841_v51 = vpop.f32.mrf.mxu0 }
 0x363   : > { %859 = vrot.lane.b32.xlu0 %v841_v51, %s1500_s25 }
 0x36a   : > { %v843_v52 = vpop.f32.mrf.mxu0 }
 0x3bd   : > { %v848_v55 = vpop.permute.xlu0 %847 }
 0x3be   : > { %851 = vst.msk [vmem:[#allocation5] sm:$0xff] %vm850_vm5, %v848_v55 }
 0x3c5   : > { %v854_v56 = vpop.permute.xlu0 %853 }
 0x3c6   : > { %857 = vst.msk [vmem:[#allocation5] sm:$0xff] %vm856_vm6, %v854_v56 }
 0x3d5   : > { %v860_v57 = vpop.permute.xlu0 %859 }
 0x3d6   : > { %863 = vst.msk [vmem:[#allocation5] sm:$0xff] %vm862_vm7, %v860_v57 }
 0x3dd   : > { %v864_v58 = vld [vmem:[#allocation5] sm:$0xff] }
 0x3de   : > { %v865_v59 = vpack.c.bf16 %v864_v58, %v864_v58 }
 0x3e0   : > { %1205 = vmatmul.msk.bf16.vlgmr.msra.gmra.mxu1 %vm540_vm0, %v865_v59 }
 0x45d   : > { %v898_v61 = vpop.f32.mrf.mxu1 }
 0x45e   : > { %v899_v62 = vadd.f32 %v1322_v60, %v898_v61 }
 0x460   : > { %v902_v63 = vadd.f32 %v899_v62, %v1691_v2  ;;  %v1241_v2 = vld [vmem:[#allocation9 + $0x8] sm:$0xff]  ;;  %v1327_v62 = vld [vmem:[%s1861_s12] ss:$0 sm:$0xff] }
 0x461   : > { %972 = vmatpush.bf16.msra.mxu2 %v1241_v2 }
 0x462   : > { %v903_v0 = vsel %vm540_vm0, %v902_v63, 0.0 }
 0x463   : > { %904 = vadd.xlane.f32.xlu1 %v903_v0 }
 0x465   : > { %v900_v1 = vpop.f32.mrf.mxu1  ;;  %973 = vmatpush.bf16.msra.mxu2 %v1240_v16 }
 0x466   : > { %v1328_v1 = vld [vmem:[%s1884_s21] ss:$0 sm:$0xff] }
 0x4d6   : > { %v905_v11 = vpop.xlane.xlu1 %904 }
 0x4d7   : > { %v913_v12 = vmul.f32 %v912_v10, %v905_v11 }
 0x4d9   : > { %v914_v13 = vsub.f32 %v902_v63, %v913_v12 }
 0x4db   : > { %v915_v14 = vmul.f32 %v914_v13, %v914_v13 }
 0x4dd   : > { %v916_v15 = vsel %vm540_vm0, %v915_v14, 0.0 }
 0x4de   : > { %917 = vadd.xlane.f32.xlu0 %v916_v15 }
 0x551   : > { %v918_v18 = vpop.xlane.xlu0 %917 }
 0x552   : > { %v919_v19 = vmul.f32 %v918_v18, %v912_v10 }
 0x554   : > { %v920_v21 = vadd.f32 1e-05, %v919_v19 }
 0x556   : > { %1347 = vrsqrt.f32 %v920_v21  ;;  %vm927_vm10 = vweird.f32 %v920_v21 }
 0x55c   : > { %v1348_v22 = vpop.eup %1347 }
 0x55d   : > { %v922_v23 = vmul.f32 %v1348_v22, %v920_v21  ;;  %vm928_vm9 = vweird.f32 %v1348_v22 }
 0x55e   : > { %vm929_vm11 = vmor %vm927_vm10, %vm928_vm9 }
 0x55f   : > { %v923_v24 = vmul.f32 %v1348_v22, %v922_v23 }
 0x561   : > { %v924_v25 = vmul.f32 0.5, %v923_v24 }
 0x563   : > { %v925_v26 = vsub.f32 1.5, %v924_v25 }
 0x565   : > { %v926_v27 = vmul.f32 %v1348_v22, %v925_v26 }
 0x567   : > { %v930_v29 = vsel %vm929_vm11, %v1348_v22, %v926_v27 }
 0x568   : > { %v931_v31 = vmul.f32 %v930_v29, %v914_v13 }
 0x56a   : > { %v936_v32 = vmul.f32 %v1323_v28, %v931_v31 }
 0x56c   : > { %v941_v33 = vadd.f32 %v1324_v30, %v936_v32 }
 0x56e   : > { %v942_v34 = vpack.c.bf16 %v941_v33, %v941_v33 }
 0x570   : > { %1214 = vmatmul.msk.bf16.vlgmr.msra.gmra.mxu2 %vm540_vm0, %v942_v34 }
 0x5f3   : > { %v975_v37 = vpop.f32.mrf.mxu2 }
 0x5f4   : > { %v976_v38 = vadd.f32 %v1325_v36, %v975_v37 }
 0x5f6   : > { %v979_v39 = vmax.f32 %v976_v38, 0.0 }
 0x5f8   : > { %v980_v40 = vpack.c.bf16 %v979_v39, %v979_v39 }
 0x5fa   : > { %1231 = vmatmul.msk.bf16.vlgmr.msra.gmra.mxu3 %vm1017_vm12, %v980_v40 }
 0x5fb   : > { %v977_v41 = vpop.f32.mrf.mxu2 }
 0x67d   : > { %v1030_v43 = vpop.f32.mrf.mxu3 }
 0x67e   : > { %v1031_v44 = vadd.f32 %v1326_v42, %v1030_v43 }
 0x680   : > { %v1034_v45 = vadd.f32 %v1031_v44, %v941_v33 }
 0x682   : > { %v1035_v46 = vsel %vm540_vm0, %v1034_v45, 0.0 }
 0x683   : > { %1036 = vadd.xlane.f32.xlu1 %v1035_v46 }
 0x685   : > { %v1032_v47 = vpop.f32.mrf.mxu3 }
 0x6f6   : > { %v1037_v48 = vpop.xlane.xlu1 %1036 }
 0x6f7   : > { %v1038_v49 = vmul.f32 %v1037_v48, %v912_v10 }
 0x6f9   : > { %v1039_v50 = vsub.f32 %v1034_v45, %v1038_v49 }
 0x6fb   : > { %v1040_v51 = vmul.f32 %v1039_v50, %v1039_v50 }
 0x6fd   : > { %v1041_v52 = vsel %vm540_vm0, %v1040_v51, 0.0 }
 0x6fe   : > { %1042 = vadd.xlane.f32.xlu2 %v1041_v52 }
 0x771   : > { %v1043_v53 = vpop.xlane.xlu2 %1042 }
 0x772   : > { %v1044_v54 = vmul.f32 %v1043_v53, %v912_v10 }
 0x774   : > { %v1045_v55 = vadd.f32 1e-05, %v1044_v54 }
 0x776   : > { %1349 = vrsqrt.f32 %v1045_v55  ;;  %vm1052_vm14 = vweird.f32 %v1045_v55 }
 0x77c   : > { %v1350_v56 = vpop.eup %1349 }
 0x77d   : > { %v1047_v57 = vmul.f32 %v1350_v56, %v1045_v55  ;;  %vm1053_vm13 = vweird.f32 %v1350_v56 }
 0x77e   : > { %vm1054_vm15 = vmor %vm1052_vm14, %vm1053_vm13 }
 0x77f   : > { %v1048_v58 = vmul.f32 %v1350_v56, %v1047_v57 }
 0x781   : > { %v1049_v59 = vmul.f32 0.5, %v1048_v58 }
 0x783   : > { %v1050_v60 = vsub.f32 1.5, %v1049_v59 }
 0x785   : > { %v1051_v61 = vmul.f32 %v1350_v56, %v1050_v60 }
 0x787   : > { %v1055_v63 = vsel %vm1054_vm15, %v1350_v56, %v1051_v61 }
 0x788   : > { %v1056_v0 = vmul.f32 %v1055_v63, %v1039_v50 }
 0x78a   : > { %v1061_v3 = vmul.f32 %v1327_v62, %v1056_v0 }
 0x78c   : > { %v1066_v4 = vadd.f32 %v1328_v1, %v1061_v3 }
 0x78e   : > { %1067 = vst.msk [vmem:[%s510_s20] sm:$0xff] %vm540_vm0, %v1066_v4 }
 0x78f   : > { %1438 = shalt.err (!%p1435_p10)
}
 0x790   : > { %1252 = dma.vmem_to_hbm [thread:$0]  (%p1637_p13), %s1082_s28, 128, %s1084_s27, %s1069_s22  }
 0x791 PF: > { %s1885_s23 = sld [smem:[#allocation15_spill]] }
 0x792   : > { %s1886_s15 = sld [smem:[#allocation17_spill]] }
 0x797   : > { %s1095_s16 = sand.u32 1, %s1885_s23  }
 0x798   : > { %p1887_p11 = scmp.ge.s32.totalorder %s1886_s15, 2  ;;  %s1096_s21 = scalar_lea.sflag [#allocation8], %s1095_s16 }
 0x79a   : > { %p1263_p0 = pnand %p1887_p11, %p1642_p4 }
 0x79c   : > { %p1264_p2 = pneg %p1263_p0 }
 0x79e   : > { %1464 = dma.done.wait (%p1264_p2), %s1096_s21, 128  }
 0x79f   : > { %1466 = vsyncadd (%p1264_p2), %s1096_s21, 4294967168  ;;  %s1888_s16 = sld [smem:[#allocation18_spill]]  ;;  %s1891_s29 = smov %s1473_s30 }
 0x7a0   : > { %s1889_s20 = sld [smem:[#allocation16_spill]] }
 0x7a1   : > { %s1890_s15 = sld [smem:[#allocation19_spill]] }
 0x7a5   : > { %p28_p6 = scmp.ge.s32.totalorder %s1888_s16, 4  }
 0x7a6   : > { %s1892_s30 = smov %s1889_s20 }
 0x7a7   :  { %30 = sbr.rel (!%p28_p6) target bundleno = 9 (0x9), region = 137 }
 0x7ac   :  { %1102 = vsyncpa [#allocation7], 1 }
 0x7ad   :  { %1104 = vsyncpa [#allocation7 + $0x1], 1 }
 0x7ae   :  { %1105 = vsyncpa [#allocation10], 1 }
 0x7af   :  { %1106 = vsyncpa [#allocation8], 1 }
 0x7b0   :  { %1108 = vsyncpa [#allocation8 + $0x1], 1 }

</bundles_post_ra>
